<compile_context>
chip_gen: v5e
topology: v5e:2x2
jax: 0.10.0
libtpu: 0.0.40
codegen_flags: <defaults>
</compile_context>

<pallas_src>
import functools

import jax
import jax.numpy as jnp
from jax.experimental import pallas as pl
from jax.experimental.pallas import tpu as pltpu

_ROWS = 8  # batch rows per grid step (fills the 8 f32 sublanes of a vreg)


def _ssd_loss_kernel(conf_ref, lab_ref, loss_ref, npos_ref, *, neg_pos_ratio):
    # conf_ref: (2, R, N) f32  -> [0] = background logit, [1] = ball logit
    # lab_ref : (R, N)   int32 -> padded rows hold -1
    c0 = conf_ref[0]                                     # (R, N)
    c1 = conf_ref[1]                                     # (R, N)
    lab = lab_ref[...]                                   # (R, N)
    n = lab.shape[-1]

    # 2-class log-softmax via softplus:
    #   -log p(background) = softplus(c1 - c0) = sp
    #   -log p(ball)       = sp - (c1 - c0)
    d = c1 - c0
    sp = jnp.maximum(d, 0.0) + jnp.log(1.0 + jnp.exp(-jnp.abs(d)))

    pos = lab > 0                                        # (R, N)
    posf = pos.astype(jnp.float32)
    valid = (lab[:, 0:1] >= 0).astype(jnp.float32)       # (R, 1); 0 for pad rows

    num_pos = jnp.sum(posf, axis=1, keepdims=True)       # (R, 1)
    num_pos_c = jnp.maximum(num_pos, 1.0) * valid        # clamp to 1, zero pads
    num_neg = num_pos_c * neg_pos_ratio
    # allowed = ceil(num_neg) without relying on a ceil op
    nn_floor = num_neg.astype(jnp.int32).astype(jnp.float32)
    allowed = jnp.where(nn_floor == num_neg, nn_floor, nn_floor + 1.0)
    # number of negatives actually selected (cannot exceed #negatives)
    k_sel = jnp.minimum(allowed, float(n) - num_pos)     # (R, 1)

    # positives are always selected: CE = -log p(ball) = sp - d
    ce_pos = jnp.sum(jnp.where(pos, sp - d, 0.0), axis=1, keepdims=True)

    # Hard-negative mining as a K-th order-statistic search on the int32 bit
    # pattern of the mining loss (sp >= 0 -> bits form a monotone int32 key).
    # Positives get key -1 so they are never counted as negatives.
    keys = jnp.where(pos, jnp.int32(-1), pltpu.bitcast(sp, jnp.int32))  # (R, N)

    cand = jnp.zeros((lab.shape[0], 1), jnp.int32)       # (R, 1)
    for b in range(30, -1, -1):                          # keys < 2**31
        trial = cand | jnp.int32(1 << b)
        cnt = jnp.sum((keys >= trial).astype(jnp.float32),
                      axis=1, keepdims=True)
        cand = jnp.where(cnt >= k_sel, trial, cand)
    # cand = bit pattern of the K-th largest negative mining loss (if K >= 1)

    gt = keys > cand
    c_gt = jnp.sum(gt.astype(jnp.float32), axis=1, keepdims=True)
    full_sum = jnp.sum(jnp.where(gt, sp, 0.0), axis=1, keepdims=True)
    # all ties at the threshold share identical CE (= the mining loss itself)
    tie_val = jnp.max(jnp.where(keys == cand, sp, 0.0), axis=1, keepdims=True)
    neg_sum = full_sum + (k_sel - c_gt) * tie_val        # exact under ties

    total_loss = jnp.sum(ce_pos + neg_sum)
    total_npos = jnp.sum(num_pos_c)
    loss_ref[...] = jnp.zeros_like(loss_ref) + total_loss
    npos_ref[...] = jnp.zeros_like(npos_ref) + total_npos


def ssd_loss_pallas(conf, labels, neg_pos_ratio=3.0):
    """conf: (B, N, 2) float; labels: (B, N) int in {0,1}. Returns scalar loss."""
    B, N, C = conf.shape
    assert C == 2, "SSDLoss reshapes confidence to (B, -1, 2)"
    assert N % 128 == 0, "priors dim must be lane-aligned (multiple of 128)"

    R = _ROWS
    G = (B + R - 1) // R
    B_pad = G * R

    conf_t = jnp.transpose(conf.astype(jnp.float32), (2, 0, 1))   # (2, B, N)
    lab = labels.astype(jnp.int32)
    if B_pad != B:
        conf_t = jnp.pad(conf_t, ((0, 0), (0, B_pad - B), (0, 0)))
        lab = jnp.pad(lab, ((0, B_pad - B), (0, 0)), constant_values=-1)

    kernel = functools.partial(_ssd_loss_kernel,
                               neg_pos_ratio=float(neg_pos_ratio))

    acc_spec = pl.BlockSpec((1, 1, 1), lambda b: (b, 0, 0))
    loss_parts, npos_parts = pl.pallas_call(
        kernel,
        out_shape=(jax.ShapeDtypeStruct((G, 1, 1), jnp.float32),
                   jax.ShapeDtypeStruct((G, 1, 1), jnp.float32)),
        grid=(G,),
        in_specs=[pl.BlockSpec((2, R, N), lambda b: (0, b, 0)),
                  pl.BlockSpec((R, N), lambda b: (b, 0))],
        out_specs=(acc_spec, acc_spec),
        compiler_params=pltpu.CompilerParams(
            dimension_semantics=("parallel",)),
    )(conf_t, lab)

    return jnp.sum(loss_parts) / jnp.sum(npos_parts)


def ssd_loss_ref(conf, labels, neg_pos_ratio=3.0):
    """Pure-JAX reference mirroring the PyTorch forward."""
    conf = conf.astype(jnp.float32)
    logp = jax.nn.log_softmax(conf, axis=2)
    loss = -logp[:, :, 0]
    pos = labels > 0
    num_pos = jnp.sum(pos.astype(jnp.int32), axis=1, keepdims=True)
    num_pos = jnp.where(num_pos == 0, 1, num_pos)
    num_neg = num_pos * neg_pos_ratio
    lm = jnp.where(pos, -jnp.inf, loss)
    idx = jnp.argsort(-lm, axis=1)
    orders = jnp.argsort(idx, axis=1)
    neg_mask = orders < num_neg
    mask = pos | neg_mask
    ce = -jnp.take_along_axis(logp, labels[..., None].astype(jnp.int32),
                              axis=2)[..., 0]
    total = jnp.sum(jnp.where(mask, ce, 0.0))
    return total / jnp.sum(num_pos).astype(jnp.float32)


if __name__ == "__main__":
    key = jax.random.PRNGKey(0)
    k1, k2, k3, k4 = jax.random.split(key, 4)

    # case 1: 2 images, 128 priors, 2 classes
    B, N = 2, 128
    conf = jax.random.normal(k1, (B, N, 2), dtype=jnp.float32)
    labels = (jax.random.uniform(k2, (B, N)) < 0.1).astype(jnp.int32)
    labels = labels.at[0, 3].set(1)        # guarantee at least one positive

    out = jax.block_until_ready(ssd_loss_pallas(conf, labels, 3.0))
    ref = ssd_loss_ref(conf, labels, 3.0)
    assert jnp.allclose(out, ref, rtol=1e-4, atol=1e-4), (out, ref)

    # case 2: non-multiple-of-8 batch (exercises padding), a row with zero
    # positives (num_pos clamp), and duplicated logits (tied mining losses).
    B2, N2 = 3, 256
    conf2 = jax.random.normal(k3, (B2, N2, 2), dtype=jnp.float32)
    conf2 = conf2.at[1, 16:32, :].set(conf2[1, 16, :])   # force ties
    labels2 = (jax.random.uniform(k4, (B2, N2)) < 0.05).astype(jnp.int32)
    labels2 = labels2.at[2, :].set(0)                    # num_pos == 0 row

    out2 = jax.block_until_ready(ssd_loss_pallas(conf2, labels2, 3.0))
    ref2 = ssd_loss_ref(conf2, labels2, 3.0)
    assert jnp.allclose(out2, ref2, rtol=1e-4, atol=1e-4), (out2, ref2)

    print("KERNEL_OK")
</pallas_src>

<mosaic_0001>
module attributes {stable_mosaic.version = 11 : i64} {
  func.func @_ssd_loss_kernel(%arg0: i32, %arg1: memref<2x8x128xf32, #tpu.memory_space<vmem>>, %arg2: memref<8x128xi32, #tpu.memory_space<vmem>>, %arg3: memref<1x1x1xf32, #tpu.memory_space<vmem>>, %arg4: memref<1x1x1xf32, #tpu.memory_space<vmem>>) attributes {dimension_semantics = [#tpu.dimension_semantics<parallel>], iteration_bounds = array<i64: 1>, scalar_prefetch = 0 : i64, scratch_operands = 0 : i64, tpu.core_type = #tpu.core_type<tc>, window_params = [{transform_indices = @transform_0, window_bounds = array<i64: 2, 8, 128>}, {transform_indices = @transform_1, window_bounds = array<i64: 8, 128>}, {transform_indices = @transform_2, window_bounds = array<i64: 1, 1, 1>}, {transform_indices = @transform_3, window_bounds = array<i64: 1, 1, 1>}]} {
    %c0 = arith.constant 0 : index
    %c0_0 = arith.constant 0 : index
    %c0_1 = arith.constant 0 : index
    %0 = vector.load %arg1[%c0, %c0_0, %c0_1] : memref<2x8x128xf32, #tpu.memory_space<vmem>>, vector<1x8x128xf32>
    %1 = vector.shape_cast %0 : vector<1x8x128xf32> to vector<8x128xf32>
    %c1 = arith.constant 1 : index
    %c0_2 = arith.constant 0 : index
    %c0_3 = arith.constant 0 : index
    %2 = vector.load %arg1[%c1, %c0_2, %c0_3] : memref<2x8x128xf32, #tpu.memory_space<vmem>>, vector<1x8x128xf32>
    %3 = vector.shape_cast %2 : vector<1x8x128xf32> to vector<8x128xf32>
    %c0_4 = arith.constant 0 : index
    %c0_5 = arith.constant 0 : index
    %4 = vector.load %arg2[%c0_4, %c0_5] : memref<8x128xi32, #tpu.memory_space<vmem>>, vector<8x128xi32>
    %5 = arith.subf %3, %1 : vector<8x128xf32>
    %cst = arith.constant 0.000000e+00 : f32
    %6 = vector.broadcast %cst : f32 to vector<8x128xf32>
    %7 = arith.maximumf %5, %6 : vector<8x128xf32>
    %8 = math.absf %5 : vector<8x128xf32>
    %cst_6 = arith.constant 0.000000e+00 : f32
    %9 = vector.broadcast %cst_6 : f32 to vector<8x128xf32>
    %10 = arith.subf %9, %8 : vector<8x128xf32>
    %11 = math.exp %10 : vector<8x128xf32>
    %cst_7 = arith.constant 1.000000e+00 : f32
    %12 = vector.broadcast %cst_7 : f32 to vector<8x128xf32>
    %13 = arith.addf %12, %11 : vector<8x128xf32>
    %14 = math.log %13 : vector<8x128xf32>
    %15 = arith.addf %7, %14 : vector<8x128xf32>
    %c0_i32 = arith.constant 0 : i32
    %16 = vector.broadcast %c0_i32 : i32 to vector<8x128xi32>
    %17 = arith.cmpi sgt, %4, %16 : vector<8x128xi32>
    %18 = arith.extui %17 : vector<8x128xi1> to vector<8x128xi32>
    %19 = arith.sitofp %18 : vector<8x128xi32> to vector<8x128xf32>
    %20 = vector.extract_strided_slice %4 {offsets = [0, 0], sizes = [8, 1], strides = [1, 1]} : vector<8x128xi32> to vector<8x1xi32>
    %c0_i32_8 = arith.constant 0 : i32
    %21 = vector.broadcast %c0_i32_8 : i32 to vector<8x1xi32>
    %22 = arith.cmpi sge, %20, %21 : vector<8x1xi32>
    %23 = arith.extui %22 : vector<8x1xi1> to vector<8x1xi32>
    %24 = arith.sitofp %23 : vector<8x1xi32> to vector<8x1xf32>
    %cst_9 = arith.constant dense<0.000000e+00> : vector<8xf32>
    %25 = vector.multi_reduction <add>, %19, %cst_9 [1] : vector<8x128xf32> to vector<8xf32>
    %26 = vector.shape_cast %25 : vector<8xf32> to vector<8x1xf32>
    %cst_10 = arith.constant 1.000000e+00 : f32
    %27 = vector.broadcast %cst_10 : f32 to vector<8x1xf32>
    %28 = arith.maximumf %26, %27 : vector<8x1xf32>
    %29 = arith.mulf %28, %24 : vector<8x1xf32>
    %cst_11 = arith.constant 3.000000e+00 : f32
    %30 = vector.broadcast %cst_11 : f32 to vector<8x1xf32>
    %31 = arith.mulf %29, %30 : vector<8x1xf32>
    %32 = arith.fptosi %31 : vector<8x1xf32> to vector<8x1xi32>
    %33 = arith.sitofp %32 : vector<8x1xi32> to vector<8x1xf32>
    %34 = arith.cmpf oeq, %33, %31 : vector<8x1xf32>
    %cst_12 = arith.constant 1.000000e+00 : f32
    %35 = vector.broadcast %cst_12 : f32 to vector<8x1xf32>
    %36 = arith.addf %33, %35 : vector<8x1xf32>
    %37 = arith.select %34, %33, %36 : vector<8x1xi1>, vector<8x1xf32>
    %cst_13 = arith.constant 1.280000e+02 : f32
    %38 = vector.broadcast %cst_13 : f32 to vector<8x1xf32>
    %39 = arith.subf %38, %26 : vector<8x1xf32>
    %40 = arith.minimumf %37, %39 : vector<8x1xf32>
    %41 = arith.subf %15, %5 : vector<8x128xf32>
    %cst_14 = arith.constant 0.000000e+00 : f32
    %42 = vector.broadcast %cst_14 : f32 to vector<8x128xf32>
    %43 = arith.select %17, %41, %42 : vector<8x128xi1>, vector<8x128xf32>
    %cst_15 = arith.constant dense<0.000000e+00> : vector<8xf32>
    %44 = vector.multi_reduction <add>, %43, %cst_15 [1] : vector<8x128xf32> to vector<8xf32>
    %45 = vector.shape_cast %44 : vector<8xf32> to vector<8x1xf32>
    %46 = tpu.bitcast %15 : vector<8x128xf32> -> vector<8x128xi32>
    %c-1_i32 = arith.constant -1 : i32
    %47 = vector.broadcast %c-1_i32 : i32 to vector<8x128xi32>
    %48 = arith.select %17, %47, %46 : vector<8x128xi1>, vector<8x128xi32>
    %c0_i32_16 = arith.constant 0 : i32
    %49 = vector.broadcast %c0_i32_16 : i32 to vector<8x1xi32>
    %c1073741824_i32 = arith.constant 1073741824 : i32
    %50 = vector.broadcast %c1073741824_i32 : i32 to vector<8x1xi32>
    %51 = arith.ori %49, %50 : vector<8x1xi32>
    %52 = vector.broadcast %51 : vector<8x1xi32> to vector<8x128xi32>
    %53 = arith.cmpi sge, %48, %52 : vector<8x128xi32>
    %54 = arith.extui %53 : vector<8x128xi1> to vector<8x128xi32>
    %55 = arith.sitofp %54 : vector<8x128xi32> to vector<8x128xf32>
    %cst_17 = arith.constant dense<0.000000e+00> : vector<8xf32>
    %56 = vector.multi_reduction <add>, %55, %cst_17 [1] : vector<8x128xf32> to vector<8xf32>
    %57 = vector.shape_cast %56 : vector<8xf32> to vector<8x1xf32>
    %58 = arith.cmpf oge, %57, %40 : vector<8x1xf32>
    %59 = arith.select %58, %51, %49 : vector<8x1xi1>, vector<8x1xi32>
    %c536870912_i32 = arith.constant 536870912 : i32
    %60 = vector.broadcast %c536870912_i32 : i32 to vector<8x1xi32>
    %61 = arith.ori %59, %60 : vector<8x1xi32>
    %62 = vector.broadcast %61 : vector<8x1xi32> to vector<8x128xi32>
    %63 = arith.cmpi sge, %48, %62 : vector<8x128xi32>
    %64 = arith.extui %63 : vector<8x128xi1> to vector<8x128xi32>
    %65 = arith.sitofp %64 : vector<8x128xi32> to vector<8x128xf32>
    %cst_18 = arith.constant dense<0.000000e+00> : vector<8xf32>
    %66 = vector.multi_reduction <add>, %65, %cst_18 [1] : vector<8x128xf32> to vector<8xf32>
    %67 = vector.shape_cast %66 : vector<8xf32> to vector<8x1xf32>
    %68 = arith.cmpf oge, %67, %40 : vector<8x1xf32>
    %69 = arith.select %68, %61, %59 : vector<8x1xi1>, vector<8x1xi32>
    %c268435456_i32 = arith.constant 268435456 : i32
    %70 = vector.broadcast %c268435456_i32 : i32 to vector<8x1xi32>
    %71 = arith.ori %69, %70 : vector<8x1xi32>
    %72 = vector.broadcast %71 : vector<8x1xi32> to vector<8x128xi32>
    %73 = arith.cmpi sge, %48, %72 : vector<8x128xi32>
    %74 = arith.extui %73 : vector<8x128xi1> to vector<8x128xi32>
    %75 = arith.sitofp %74 : vector<8x128xi32> to vector<8x128xf32>
    %cst_19 = arith.constant dense<0.000000e+00> : vector<8xf32>
    %76 = vector.multi_reduction <add>, %75, %cst_19 [1] : vector<8x128xf32> to vector<8xf32>
    %77 = vector.shape_cast %76 : vector<8xf32> to vector<8x1xf32>
    %78 = arith.cmpf oge, %77, %40 : vector<8x1xf32>
    %79 = arith.select %78, %71, %69 : vector<8x1xi1>, vector<8x1xi32>
    %c134217728_i32 = arith.constant 134217728 : i32
    %80 = vector.broadcast %c134217728_i32 : i32 to vector<8x1xi32>
    %81 = arith.ori %79, %80 : vector<8x1xi32>
    %82 = vector.broadcast %81 : vector<8x1xi32> to vector<8x128xi32>
    %83 = arith.cmpi sge, %48, %82 : vector<8x128xi32>
    %84 = arith.extui %83 : vector<8x128xi1> to vector<8x128xi32>
    %85 = arith.sitofp %84 : vector<8x128xi32> to vector<8x128xf32>
    %cst_20 = arith.constant dense<0.000000e+00> : vector<8xf32>
    %86 = vector.multi_reduction <add>, %85, %cst_20 [1] : vector<8x128xf32> to vector<8xf32>
    %87 = vector.shape_cast %86 : vector<8xf32> to vector<8x1xf32>
    %88 = arith.cmpf oge, %87, %40 : vector<8x1xf32>
    %89 = arith.select %88, %81, %79 : vector<8x1xi1>, vector<8x1xi32>
    %c67108864_i32 = arith.constant 67108864 : i32
    %90 = vector.broadcast %c67108864_i32 : i32 to vector<8x1xi32>
    %91 = arith.ori %89, %90 : vector<8x1xi32>
    %92 = vector.broadcast %91 : vector<8x1xi32> to vector<8x128xi32>
    %93 = arith.cmpi sge, %48, %92 : vector<8x128xi32>
    %94 = arith.extui %93 : vector<8x128xi1> to vector<8x128xi32>
    %95 = arith.sitofp %94 : vector<8x128xi32> to vector<8x128xf32>
    %cst_21 = arith.constant dense<0.000000e+00> : vector<8xf32>
    %96 = vector.multi_reduction <add>, %95, %cst_21 [1] : vector<8x128xf32> to vector<8xf32>
    %97 = vector.shape_cast %96 : vector<8xf32> to vector<8x1xf32>
    %98 = arith.cmpf oge, %97, %40 : vector<8x1xf32>
    %99 = arith.select %98, %91, %89 : vector<8x1xi1>, vector<8x1xi32>
    %c33554432_i32 = arith.constant 33554432 : i32
    %100 = vector.broadcast %c33554432_i32 : i32 to vector<8x1xi32>
    %101 = arith.ori %99, %100 : vector<8x1xi32>
    %102 = vector.broadcast %101 : vector<8x1xi32> to vector<8x128xi32>
    %103 = arith.cmpi sge, %48, %102 : vector<8x128xi32>
    %104 = arith.extui %103 : vector<8x128xi1> to vector<8x128xi32>
    %105 = arith.sitofp %104 : vector<8x128xi32> to vector<8x128xf32>
    %cst_22 = arith.constant dense<0.000000e+00> : vector<8xf32>
    %106 = vector.multi_reduction <add>, %105, %cst_22 [1] : vector<8x128xf32> to vector<8xf32>
    %107 = vector.shape_cast %106 : vector<8xf32> to vector<8x1xf32>
    %108 = arith.cmpf oge, %107, %40 : vector<8x1xf32>
    %109 = arith.select %108, %101, %99 : vector<8x1xi1>, vector<8x1xi32>
    %c16777216_i32 = arith.constant 16777216 : i32
    %110 = vector.broadcast %c16777216_i32 : i32 to vector<8x1xi32>
    %111 = arith.ori %109, %110 : vector<8x1xi32>
    %112 = vector.broadcast %111 : vector<8x1xi32> to vector<8x128xi32>
    %113 = arith.cmpi sge, %48, %112 : vector<8x128xi32>
    %114 = arith.extui %113 : vector<8x128xi1> to vector<8x128xi32>
    %115 = arith.sitofp %114 : vector<8x128xi32> to vector<8x128xf32>
    %cst_23 = arith.constant dense<0.000000e+00> : vector<8xf32>
    %116 = vector.multi_reduction <add>, %115, %cst_23 [1] : vector<8x128xf32> to vector<8xf32>
    %117 = vector.shape_cast %116 : vector<8xf32> to vector<8x1xf32>
    %118 = arith.cmpf oge, %117, %40 : vector<8x1xf32>
    %119 = arith.select %118, %111, %109 : vector<8x1xi1>, vector<8x1xi32>
    %c8388608_i32 = arith.constant 8388608 : i32
    %120 = vector.broadcast %c8388608_i32 : i32 to vector<8x1xi32>
    %121 = arith.ori %119, %120 : vector<8x1xi32>
    %122 = vector.broadcast %121 : vector<8x1xi32> to vector<8x128xi32>
    %123 = arith.cmpi sge, %48, %122 : vector<8x128xi32>
    %124 = arith.extui %123 : vector<8x128xi1> to vector<8x128xi32>
    %125 = arith.sitofp %124 : vector<8x128xi32> to vector<8x128xf32>
    %cst_24 = arith.constant dense<0.000000e+00> : vector<8xf32>
    %126 = vector.multi_reduction <add>, %125, %cst_24 [1] : vector<8x128xf32> to vector<8xf32>
    %127 = vector.shape_cast %126 : vector<8xf32> to vector<8x1xf32>
    %128 = arith.cmpf oge, %127, %40 : vector<8x1xf32>
    %129 = arith.select %128, %121, %119 : vector<8x1xi1>, vector<8x1xi32>
    %c4194304_i32 = arith.constant 4194304 : i32
    %130 = vector.broadcast %c4194304_i32 : i32 to vector<8x1xi32>
    %131 = arith.ori %129, %130 : vector<8x1xi32>
    %132 = vector.broadcast %131 : vector<8x1xi32> to vector<8x128xi32>
    %133 = arith.cmpi sge, %48, %132 : vector<8x128xi32>
    %134 = arith.extui %133 : vector<8x128xi1> to vector<8x128xi32>
    %135 = arith.sitofp %134 : vector<8x128xi32> to vector<8x128xf32>
    %cst_25 = arith.constant dense<0.000000e+00> : vector<8xf32>
    %136 = vector.multi_reduction <add>, %135, %cst_25 [1] : vector<8x128xf32> to vector<8xf32>
    %137 = vector.shape_cast %136 : vector<8xf32> to vector<8x1xf32>
    %138 = arith.cmpf oge, %137, %40 : vector<8x1xf32>
    %139 = arith.select %138, %131, %129 : vector<8x1xi1>, vector<8x1xi32>
    %c2097152_i32 = arith.constant 2097152 : i32
    %140 = vector.broadcast %c2097152_i32 : i32 to vector<8x1xi32>
    %141 = arith.ori %139, %140 : vector<8x1xi32>
    %142 = vector.broadcast %141 : vector<8x1xi32> to vector<8x128xi32>
    %143 = arith.cmpi sge, %48, %142 : vector<8x128xi32>
    %144 = arith.extui %143 : vector<8x128xi1> to vector<8x128xi32>
    %145 = arith.sitofp %144 : vector<8x128xi32> to vector<8x128xf32>
    %cst_26 = arith.constant dense<0.000000e+00> : vector<8xf32>
    %146 = vector.multi_reduction <add>, %145, %cst_26 [1] : vector<8x128xf32> to vector<8xf32>
    %147 = vector.shape_cast %146 : vector<8xf32> to vector<8x1xf32>
    %148 = arith.cmpf oge, %147, %40 : vector<8x1xf32>
    %149 = arith.select %148, %141, %139 : vector<8x1xi1>, vector<8x1xi32>
    %c1048576_i32 = arith.constant 1048576 : i32
    %150 = vector.broadcast %c1048576_i32 : i32 to vector<8x1xi32>
    %151 = arith.ori %149, %150 : vector<8x1xi32>
    %152 = vector.broadcast %151 : vector<8x1xi32> to vector<8x128xi32>
    %153 = arith.cmpi sge, %48, %152 : vector<8x128xi32>
    %154 = arith.extui %153 : vector<8x128xi1> to vector<8x128xi32>
    %155 = arith.sitofp %154 : vector<8x128xi32> to vector<8x128xf32>
    %cst_27 = arith.constant dense<0.000000e+00> : vector<8xf32>
    %156 = vector.multi_reduction <add>, %155, %cst_27 [1] : vector<8x128xf32> to vector<8xf32>
    %157 = vector.shape_cast %156 : vector<8xf32> to vector<8x1xf32>
    %158 = arith.cmpf oge, %157, %40 : vector<8x1xf32>
    %159 = arith.select %158, %151, %149 : vector<8x1xi1>, vector<8x1xi32>
    %c524288_i32 = arith.constant 524288 : i32
    %160 = vector.broadcast %c524288_i32 : i32 to vector<8x1xi32>
    %161 = arith.ori %159, %160 : vector<8x1xi32>
    %162 = vector.broadcast %161 : vector<8x1xi32> to vector<8x128xi32>
    %163 = arith.cmpi sge, %48, %162 : vector<8x128xi32>
    %164 = arith.extui %163 : vector<8x128xi1> to vector<8x128xi32>
    %165 = arith.sitofp %164 : vector<8x128xi32> to vector<8x128xf32>
    %cst_28 = arith.constant dense<0.000000e+00> : vector<8xf32>
    %166 = vector.multi_reduction <add>, %165, %cst_28 [1] : vector<8x128xf32> to vector<8xf32>
    %167 = vector.shape_cast %166 : vector<8xf32> to vector<8x1xf32>
    %168 = arith.cmpf oge, %167, %40 : vector<8x1xf32>
    %169 = arith.select %168, %161, %159 : vector<8x1xi1>, vector<8x1xi32>
    %c262144_i32 = arith.constant 262144 : i32
    %170 = vector.broadcast %c262144_i32 : i32 to vector<8x1xi32>
    %171 = arith.ori %169, %170 : vector<8x1xi32>
    %172 = vector.broadcast %171 : vector<8x1xi32> to vector<8x128xi32>
    %173 = arith.cmpi sge, %48, %172 : vector<8x128xi32>
    %174 = arith.extui %173 : vector<8x128xi1> to vector<8x128xi32>
    %175 = arith.sitofp %174 : vector<8x128xi32> to vector<8x128xf32>
    %cst_29 = arith.constant dense<0.000000e+00> : vector<8xf32>
    %176 = vector.multi_reduction <add>, %175, %cst_29 [1] : vector<8x128xf32> to vector<8xf32>
    %177 = vector.shape_cast %176 : vector<8xf32> to vector<8x1xf32>
    %178 = arith.cmpf oge, %177, %40 : vector<8x1xf32>
    %179 = arith.select %178, %171, %169 : vector<8x1xi1>, vector<8x1xi32>
    %c131072_i32 = arith.constant 131072 : i32
    %180 = vector.broadcast %c131072_i32 : i32 to vector<8x1xi32>
    %181 = arith.ori %179, %180 : vector<8x1xi32>
    %182 = vector.broadcast %181 : vector<8x1xi32> to vector<8x128xi32>
    %183 = arith.cmpi sge, %48, %182 : vector<8x128xi32>
    %184 = arith.extui %183 : vector<8x128xi1> to vector<8x128xi32>
    %185 = arith.sitofp %184 : vector<8x128xi32> to vector<8x128xf32>
    %cst_30 = arith.constant dense<0.000000e+00> : vector<8xf32>
    %186 = vector.multi_reduction <add>, %185, %cst_30 [1] : vector<8x128xf32> to vector<8xf32>
    %187 = vector.shape_cast %186 : vector<8xf32> to vector<8x1xf32>
    %188 = arith.cmpf oge, %187, %40 : vector<8x1xf32>
    %189 = arith.select %188, %181, %179 : vector<8x1xi1>, vector<8x1xi32>
    %c65536_i32 = arith.constant 65536 : i32
    %190 = vector.broadcast %c65536_i32 : i32 to vector<8x1xi32>
    %191 = arith.ori %189, %190 : vector<8x1xi32>
    %192 = vector.broadcast %191 : vector<8x1xi32> to vector<8x128xi32>
    %193 = arith.cmpi sge, %48, %192 : vector<8x128xi32>
    %194 = arith.extui %193 : vector<8x128xi1> to vector<8x128xi32>
    %195 = arith.sitofp %194 : vector<8x128xi32> to vector<8x128xf32>
    %cst_31 = arith.constant dense<0.000000e+00> : vector<8xf32>
    %196 = vector.multi_reduction <add>, %195, %cst_31 [1] : vector<8x128xf32> to vector<8xf32>
    %197 = vector.shape_cast %196 : vector<8xf32> to vector<8x1xf32>
    %198 = arith.cmpf oge, %197, %40 : vector<8x1xf32>
    %199 = arith.select %198, %191, %189 : vector<8x1xi1>, vector<8x1xi32>
    %c32768_i32 = arith.constant 32768 : i32
    %200 = vector.broadcast %c32768_i32 : i32 to vector<8x1xi32>
    %201 = arith.ori %199, %200 : vector<8x1xi32>
    %202 = vector.broadcast %201 : vector<8x1xi32> to vector<8x128xi32>
    %203 = arith.cmpi sge, %48, %202 : vector<8x128xi32>
    %204 = arith.extui %203 : vector<8x128xi1> to vector<8x128xi32>
    %205 = arith.sitofp %204 : vector<8x128xi32> to vector<8x128xf32>
    %cst_32 = arith.constant dense<0.000000e+00> : vector<8xf32>
    %206 = vector.multi_reduction <add>, %205, %cst_32 [1] : vector<8x128xf32> to vector<8xf32>
    %207 = vector.shape_cast %206 : vector<8xf32> to vector<8x1xf32>
    %208 = arith.cmpf oge, %207, %40 : vector<8x1xf32>
    %209 = arith.select %208, %201, %199 : vector<8x1xi1>, vector<8x1xi32>
    %c16384_i32 = arith.constant 16384 : i32
    %210 = vector.broadcast %c16384_i32 : i32 to vector<8x1xi32>
    %211 = arith.ori %209, %210 : vector<8x1xi32>
    %212 = vector.broadcast %211 : vector<8x1xi32> to vector<8x128xi32>
    %213 = arith.cmpi sge, %48, %212 : vector<8x128xi32>
    %214 = arith.extui %213 : vector<8x128xi1> to vector<8x128xi32>
    %215 = arith.sitofp %214 : vector<8x128xi32> to vector<8x128xf32>
    %cst_33 = arith.constant dense<0.000000e+00> : vector<8xf32>
    %216 = vector.multi_reduction <add>, %215, %cst_33 [1] : vector<8x128xf32> to vector<8xf32>
    %217 = vector.shape_cast %216 : vector<8xf32> to vector<8x1xf32>
    %218 = arith.cmpf oge, %217, %40 : vector<8x1xf32>
    %219 = arith.select %218, %211, %209 : vector<8x1xi1>, vector<8x1xi32>
    %c8192_i32 = arith.constant 8192 : i32
    %220 = vector.broadcast %c8192_i32 : i32 to vector<8x1xi32>
    %221 = arith.ori %219, %220 : vector<8x1xi32>
    %222 = vector.broadcast %221 : vector<8x1xi32> to vector<8x128xi32>
    %223 = arith.cmpi sge, %48, %222 : vector<8x128xi32>
    %224 = arith.extui %223 : vector<8x128xi1> to vector<8x128xi32>
    %225 = arith.sitofp %224 : vector<8x128xi32> to vector<8x128xf32>
    %cst_34 = arith.constant dense<0.000000e+00> : vector<8xf32>
    %226 = vector.multi_reduction <add>, %225, %cst_34 [1] : vector<8x128xf32> to vector<8xf32>
    %227 = vector.shape_cast %226 : vector<8xf32> to vector<8x1xf32>
    %228 = arith.cmpf oge, %227, %40 : vector<8x1xf32>
    %229 = arith.select %228, %221, %219 : vector<8x1xi1>, vector<8x1xi32>
    %c4096_i32 = arith.constant 4096 : i32
    %230 = vector.broadcast %c4096_i32 : i32 to vector<8x1xi32>
    %231 = arith.ori %229, %230 : vector<8x1xi32>
    %232 = vector.broadcast %231 : vector<8x1xi32> to vector<8x128xi32>
    %233 = arith.cmpi sge, %48, %232 : vector<8x128xi32>
    %234 = arith.extui %233 : vector<8x128xi1> to vector<8x128xi32>
    %235 = arith.sitofp %234 : vector<8x128xi32> to vector<8x128xf32>
    %cst_35 = arith.constant dense<0.000000e+00> : vector<8xf32>
    %236 = vector.multi_reduction <add>, %235, %cst_35 [1] : vector<8x128xf32> to vector<8xf32>
    %237 = vector.shape_cast %236 : vector<8xf32> to vector<8x1xf32>
    %238 = arith.cmpf oge, %237, %40 : vector<8x1xf32>
    %239 = arith.select %238, %231, %229 : vector<8x1xi1>, vector<8x1xi32>
    %c2048_i32 = arith.constant 2048 : i32
    %240 = vector.broadcast %c2048_i32 : i32 to vector<8x1xi32>
    %241 = arith.ori %239, %240 : vector<8x1xi32>
    %242 = vector.broadcast %241 : vector<8x1xi32> to vector<8x128xi32>
    %243 = arith.cmpi sge, %48, %242 : vector<8x128xi32>
    %244 = arith.extui %243 : vector<8x128xi1> to vector<8x128xi32>
    %245 = arith.sitofp %244 : vector<8x128xi32> to vector<8x128xf32>
    %cst_36 = arith.constant dense<0.000000e+00> : vector<8xf32>
    %246 = vector.multi_reduction <add>, %245, %cst_36 [1] : vector<8x128xf32> to vector<8xf32>
    %247 = vector.shape_cast %246 : vector<8xf32> to vector<8x1xf32>
    %248 = arith.cmpf oge, %247, %40 : vector<8x1xf32>
    %249 = arith.select %248, %241, %239 : vector<8x1xi1>, vector<8x1xi32>
    %c1024_i32 = arith.constant 1024 : i32
    %250 = vector.broadcast %c1024_i32 : i32 to vector<8x1xi32>
    %251 = arith.ori %249, %250 : vector<8x1xi32>
    %252 = vector.broadcast %251 : vector<8x1xi32> to vector<8x128xi32>
    %253 = arith.cmpi sge, %48, %252 : vector<8x128xi32>
    %254 = arith.extui %253 : vector<8x128xi1> to vector<8x128xi32>
    %255 = arith.sitofp %254 : vector<8x128xi32> to vector<8x128xf32>
    %cst_37 = arith.constant dense<0.000000e+00> : vector<8xf32>
    %256 = vector.multi_reduction <add>, %255, %cst_37 [1] : vector<8x128xf32> to vector<8xf32>
    %257 = vector.shape_cast %256 : vector<8xf32> to vector<8x1xf32>
    %258 = arith.cmpf oge, %257, %40 : vector<8x1xf32>
    %259 = arith.select %258, %251, %249 : vector<8x1xi1>, vector<8x1xi32>
    %c512_i32 = arith.constant 512 : i32
    %260 = vector.broadcast %c512_i32 : i32 to vector<8x1xi32>
    %261 = arith.ori %259, %260 : vector<8x1xi32>
    %262 = vector.broadcast %261 : vector<8x1xi32> to vector<8x128xi32>
    %263 = arith.cmpi sge, %48, %262 : vector<8x128xi32>
    %264 = arith.extui %263 : vector<8x128xi1> to vector<8x128xi32>
    %265 = arith.sitofp %264 : vector<8x128xi32> to vector<8x128xf32>
    %cst_38 = arith.constant dense<0.000000e+00> : vector<8xf32>
    %266 = vector.multi_reduction <add>, %265, %cst_38 [1] : vector<8x128xf32> to vector<8xf32>
    %267 = vector.shape_cast %266 : vector<8xf32> to vector<8x1xf32>
    %268 = arith.cmpf oge, %267, %40 : vector<8x1xf32>
    %269 = arith.select %268, %261, %259 : vector<8x1xi1>, vector<8x1xi32>
    %c256_i32 = arith.constant 256 : i32
    %270 = vector.broadcast %c256_i32 : i32 to vector<8x1xi32>
    %271 = arith.ori %269, %270 : vector<8x1xi32>
    %272 = vector.broadcast %271 : vector<8x1xi32> to vector<8x128xi32>
    %273 = arith.cmpi sge, %48, %272 : vector<8x128xi32>
    %274 = arith.extui %273 : vector<8x128xi1> to vector<8x128xi32>
    %275 = arith.sitofp %274 : vector<8x128xi32> to vector<8x128xf32>
    %cst_39 = arith.constant dense<0.000000e+00> : vector<8xf32>
    %276 = vector.multi_reduction <add>, %275, %cst_39 [1] : vector<8x128xf32> to vector<8xf32>
    %277 = vector.shape_cast %276 : vector<8xf32> to vector<8x1xf32>
    %278 = arith.cmpf oge, %277, %40 : vector<8x1xf32>
    %279 = arith.select %278, %271, %269 : vector<8x1xi1>, vector<8x1xi32>
    %c128_i32 = arith.constant 128 : i32
    %280 = vector.broadcast %c128_i32 : i32 to vector<8x1xi32>
    %281 = arith.ori %279, %280 : vector<8x1xi32>
    %282 = vector.broadcast %281 : vector<8x1xi32> to vector<8x128xi32>
    %283 = arith.cmpi sge, %48, %282 : vector<8x128xi32>
    %284 = arith.extui %283 : vector<8x128xi1> to vector<8x128xi32>
    %285 = arith.sitofp %284 : vector<8x128xi32> to vector<8x128xf32>
    %cst_40 = arith.constant dense<0.000000e+00> : vector<8xf32>
    %286 = vector.multi_reduction <add>, %285, %cst_40 [1] : vector<8x128xf32> to vector<8xf32>
    %287 = vector.shape_cast %286 : vector<8xf32> to vector<8x1xf32>
    %288 = arith.cmpf oge, %287, %40 : vector<8x1xf32>
    %289 = arith.select %288, %281, %279 : vector<8x1xi1>, vector<8x1xi32>
    %c64_i32 = arith.constant 64 : i32
    %290 = vector.broadcast %c64_i32 : i32 to vector<8x1xi32>
    %291 = arith.ori %289, %290 : vector<8x1xi32>
    %292 = vector.broadcast %291 : vector<8x1xi32> to vector<8x128xi32>
    %293 = arith.cmpi sge, %48, %292 : vector<8x128xi32>
    %294 = arith.extui %293 : vector<8x128xi1> to vector<8x128xi32>
    %295 = arith.sitofp %294 : vector<8x128xi32> to vector<8x128xf32>
    %cst_41 = arith.constant dense<0.000000e+00> : vector<8xf32>
    %296 = vector.multi_reduction <add>, %295, %cst_41 [1] : vector<8x128xf32> to vector<8xf32>
    %297 = vector.shape_cast %296 : vector<8xf32> to vector<8x1xf32>
    %298 = arith.cmpf oge, %297, %40 : vector<8x1xf32>
    %299 = arith.select %298, %291, %289 : vector<8x1xi1>, vector<8x1xi32>
    %c32_i32 = arith.constant 32 : i32
    %300 = vector.broadcast %c32_i32 : i32 to vector<8x1xi32>
    %301 = arith.ori %299, %300 : vector<8x1xi32>
    %302 = vector.broadcast %301 : vector<8x1xi32> to vector<8x128xi32>
    %303 = arith.cmpi sge, %48, %302 : vector<8x128xi32>
    %304 = arith.extui %303 : vector<8x128xi1> to vector<8x128xi32>
    %305 = arith.sitofp %304 : vector<8x128xi32> to vector<8x128xf32>
    %cst_42 = arith.constant dense<0.000000e+00> : vector<8xf32>
    %306 = vector.multi_reduction <add>, %305, %cst_42 [1] : vector<8x128xf32> to vector<8xf32>
    %307 = vector.shape_cast %306 : vector<8xf32> to vector<8x1xf32>
    %308 = arith.cmpf oge, %307, %40 : vector<8x1xf32>
    %309 = arith.select %308, %301, %299 : vector<8x1xi1>, vector<8x1xi32>
    %c16_i32 = arith.constant 16 : i32
    %310 = vector.broadcast %c16_i32 : i32 to vector<8x1xi32>
    %311 = arith.ori %309, %310 : vector<8x1xi32>
    %312 = vector.broadcast %311 : vector<8x1xi32> to vector<8x128xi32>
    %313 = arith.cmpi sge, %48, %312 : vector<8x128xi32>
    %314 = arith.extui %313 : vector<8x128xi1> to vector<8x128xi32>
    %315 = arith.sitofp %314 : vector<8x128xi32> to vector<8x128xf32>
    %cst_43 = arith.constant dense<0.000000e+00> : vector<8xf32>
    %316 = vector.multi_reduction <add>, %315, %cst_43 [1] : vector<8x128xf32> to vector<8xf32>
    %317 = vector.shape_cast %316 : vector<8xf32> to vector<8x1xf32>
    %318 = arith.cmpf oge, %317, %40 : vector<8x1xf32>
    %319 = arith.select %318, %311, %309 : vector<8x1xi1>, vector<8x1xi32>
    %c8_i32 = arith.constant 8 : i32
    %320 = vector.broadcast %c8_i32 : i32 to vector<8x1xi32>
    %321 = arith.ori %319, %320 : vector<8x1xi32>
    %322 = vector.broadcast %321 : vector<8x1xi32> to vector<8x128xi32>
    %323 = arith.cmpi sge, %48, %322 : vector<8x128xi32>
    %324 = arith.extui %323 : vector<8x128xi1> to vector<8x128xi32>
    %325 = arith.sitofp %324 : vector<8x128xi32> to vector<8x128xf32>
    %cst_44 = arith.constant dense<0.000000e+00> : vector<8xf32>
    %326 = vector.multi_reduction <add>, %325, %cst_44 [1] : vector<8x128xf32> to vector<8xf32>
    %327 = vector.shape_cast %326 : vector<8xf32> to vector<8x1xf32>
    %328 = arith.cmpf oge, %327, %40 : vector<8x1xf32>
    %329 = arith.select %328, %321, %319 : vector<8x1xi1>, vector<8x1xi32>
    %c4_i32 = arith.constant 4 : i32
    %330 = vector.broadcast %c4_i32 : i32 to vector<8x1xi32>
    %331 = arith.ori %329, %330 : vector<8x1xi32>
    %332 = vector.broadcast %331 : vector<8x1xi32> to vector<8x128xi32>
    %333 = arith.cmpi sge, %48, %332 : vector<8x128xi32>
    %334 = arith.extui %333 : vector<8x128xi1> to vector<8x128xi32>
    %335 = arith.sitofp %334 : vector<8x128xi32> to vector<8x128xf32>
    %cst_45 = arith.constant dense<0.000000e+00> : vector<8xf32>
    %336 = vector.multi_reduction <add>, %335, %cst_45 [1] : vector<8x128xf32> to vector<8xf32>
    %337 = vector.shape_cast %336 : vector<8xf32> to vector<8x1xf32>
    %338 = arith.cmpf oge, %337, %40 : vector<8x1xf32>
    %339 = arith.select %338, %331, %329 : vector<8x1xi1>, vector<8x1xi32>
    %c2_i32 = arith.constant 2 : i32
    %340 = vector.broadcast %c2_i32 : i32 to vector<8x1xi32>
    %341 = arith.ori %339, %340 : vector<8x1xi32>
    %342 = vector.broadcast %341 : vector<8x1xi32> to vector<8x128xi32>
    %343 = arith.cmpi sge, %48, %342 : vector<8x128xi32>
    %344 = arith.extui %343 : vector<8x128xi1> to vector<8x128xi32>
    %345 = arith.sitofp %344 : vector<8x128xi32> to vector<8x128xf32>
    %cst_46 = arith.constant dense<0.000000e+00> : vector<8xf32>
    %346 = vector.multi_reduction <add>, %345, %cst_46 [1] : vector<8x128xf32> to vector<8xf32>
    %347 = vector.shape_cast %346 : vector<8xf32> to vector<8x1xf32>
    %348 = arith.cmpf oge, %347, %40 : vector<8x1xf32>
    %349 = arith.select %348, %341, %339 : vector<8x1xi1>, vector<8x1xi32>
    %c1_i32 = arith.constant 1 : i32
    %350 = vector.broadcast %c1_i32 : i32 to vector<8x1xi32>
    %351 = arith.ori %349, %350 : vector<8x1xi32>
    %352 = vector.broadcast %351 : vector<8x1xi32> to vector<8x128xi32>
    %353 = arith.cmpi sge, %48, %352 : vector<8x128xi32>
    %354 = arith.extui %353 : vector<8x128xi1> to vector<8x128xi32>
    %355 = arith.sitofp %354 : vector<8x128xi32> to vector<8x128xf32>
    %cst_47 = arith.constant dense<0.000000e+00> : vector<8xf32>
    %356 = vector.multi_reduction <add>, %355, %cst_47 [1] : vector<8x128xf32> to vector<8xf32>
    %357 = vector.shape_cast %356 : vector<8xf32> to vector<8x1xf32>
    %358 = arith.cmpf oge, %357, %40 : vector<8x1xf32>
    %359 = arith.select %358, %351, %349 : vector<8x1xi1>, vector<8x1xi32>
    %360 = vector.broadcast %359 : vector<8x1xi32> to vector<8x128xi32>
    %361 = arith.cmpi sgt, %48, %360 : vector<8x128xi32>
    %362 = arith.extui %361 : vector<8x128xi1> to vector<8x128xi32>
    %363 = arith.sitofp %362 : vector<8x128xi32> to vector<8x128xf32>
    %cst_48 = arith.constant dense<0.000000e+00> : vector<8xf32>
    %364 = vector.multi_reduction <add>, %363, %cst_48 [1] : vector<8x128xf32> to vector<8xf32>
    %365 = vector.shape_cast %364 : vector<8xf32> to vector<8x1xf32>
    %cst_49 = arith.constant 0.000000e+00 : f32
    %366 = vector.broadcast %cst_49 : f32 to vector<8x128xf32>
    %367 = arith.select %361, %15, %366 : vector<8x128xi1>, vector<8x128xf32>
    %cst_50 = arith.constant dense<0.000000e+00> : vector<8xf32>
    %368 = vector.multi_reduction <add>, %367, %cst_50 [1] : vector<8x128xf32> to vector<8xf32>
    %369 = vector.shape_cast %368 : vector<8xf32> to vector<8x1xf32>
    %370 = vector.broadcast %359 : vector<8x1xi32> to vector<8x128xi32>
    %371 = arith.cmpi eq, %48, %370 : vector<8x128xi32>
    %cst_51 = arith.constant 0.000000e+00 : f32
    %372 = vector.broadcast %cst_51 : f32 to vector<8x128xf32>
    %373 = arith.select %371, %15, %372 : vector<8x128xi1>, vector<8x128xf32>
    %cst_52 = arith.constant dense<0xFF800000> : vector<8xf32>
    %374 = vector.multi_reduction <maximumf>, %373, %cst_52 [1] : vector<8x128xf32> to vector<8xf32>
    %375 = vector.shape_cast %374 : vector<8xf32> to vector<8x1xf32>
    %376 = arith.subf %40, %365 : vector<8x1xf32>
    %377 = arith.mulf %376, %375 : vector<8x1xf32>
    %378 = arith.addf %369, %377 : vector<8x1xf32>
    %379 = arith.addf %45, %378 : vector<8x1xf32>
    %380 = vector.shape_cast %379 : vector<8x1xf32> to vector<1x8x1xf32>
    %cst_53 = arith.constant dense<0.000000e+00> : vector<1xf32>
    %381 = vector.multi_reduction <add>, %380, %cst_53 [1, 2] : vector<1x8x1xf32> to vector<1xf32>
    %382 = vector.shape_cast %381 : vector<1xf32> to vector<1x1x1xf32>
    %383 = vector.extract %382[0, 0, 0] : f32 from vector<1x1x1xf32>
    %384 = vector.shape_cast %29 : vector<8x1xf32> to vector<1x8x1xf32>
    %cst_54 = arith.constant dense<0.000000e+00> : vector<1xf32>
    %385 = vector.multi_reduction <add>, %384, %cst_54 [1, 2] : vector<1x8x1xf32> to vector<1xf32>
    %386 = vector.shape_cast %385 : vector<1xf32> to vector<1x1x1xf32>
    %387 = vector.extract %386[0, 0, 0] : f32 from vector<1x1x1xf32>
    %cst_55 = arith.constant 0.000000e+00 : f32
    %388 = vector.broadcast %cst_55 : f32 to vector<1x1x1xf32>
    %389 = vector.broadcast %383 : f32 to vector<1x1x1xf32>
    %390 = arith.addf %388, %389 : vector<1x1x1xf32>
    %c0_56 = arith.constant 0 : index
    %c0_57 = arith.constant 0 : index
    %c0_58 = arith.constant 0 : index
    %391 = vector.load %arg3[%c0_56, %c0_57, %c0_58] : memref<1x1x1xf32, #tpu.memory_space<vmem>>, vector<1x1x1xf32>
    tpu.vector_store %arg3[%c0_56, %c0_57, %c0_58], %390 {strides = array<i32>} : memref<1x1x1xf32, #tpu.memory_space<vmem>>, vector<1x1x1xf32>,
    %cst_59 = arith.constant 0.000000e+00 : f32
    %392 = vector.broadcast %cst_59 : f32 to vector<1x1x1xf32>
    %393 = vector.broadcast %387 : f32 to vector<1x1x1xf32>
    %394 = arith.addf %392, %393 : vector<1x1x1xf32>
    %c0_60 = arith.constant 0 : index
    %c0_61 = arith.constant 0 : index
    %c0_62 = arith.constant 0 : index
    %395 = vector.load %arg4[%c0_60, %c0_61, %c0_62] : memref<1x1x1xf32, #tpu.memory_space<vmem>>, vector<1x1x1xf32>
    tpu.vector_store %arg4[%c0_60, %c0_61, %c0_62], %394 {strides = array<i32>} : memref<1x1x1xf32, #tpu.memory_space<vmem>>, vector<1x1x1xf32>,
    return
  }
  func.func @transform_0(%arg0: i32) -> (i32, i32, i32) {
    %c0_i32 = arith.constant 0 : i32
    %c0_i32_0 = arith.constant 0 : i32
    %c0_i32_1 = arith.constant 0 : i32
    return %c0_i32, %arg0, %c0_i32_0 : i32, i32, i32
  }
  func.func @transform_1(%arg0: i32) -> (i32, i32) {
    %c0_i32 = arith.constant 0 : i32
    %c0_i32_0 = arith.constant 0 : i32
    return %arg0, %c0_i32 : i32, i32
  }
  func.func @transform_2(%arg0: i32) -> (i32, i32, i32) {
    %c0_i32 = arith.constant 0 : i32
    %c0_i32_0 = arith.constant 0 : i32
    %c0_i32_1 = arith.constant 0 : i32
    return %arg0, %c0_i32, %c0_i32_0 : i32, i32, i32
  }
  func.func @transform_3(%arg0: i32) -> (i32, i32, i32) {
    %c0_i32 = arith.constant 0 : i32
    %c0_i32_0 = arith.constant 0 : i32
    %c0_i32_1 = arith.constant 0 : i32
    return %arg0, %c0_i32, %c0_i32_0 : i32, i32, i32
  }
}

</mosaic_0001>

<bundles_post_ra>
// kernel: tpu_custom_call.1
= control target key start
LH: loop header
LB: loop body
LE: loop exit
PB: predicated region body
PF: predicated region fallthrough
CT: control target
= control target key end

     0   :  { %9 = vsyncpa [#allocation3], 0  ;;  %s831_s0 = inlined_call_operand.hbm [shape: f32[2,8,128], index: 0, kind: input, shape index: {}]   ;;  %s832_s1 = inlined_call_operand.hbm [shape: s32[8,128], index: 1, kind: input, shape index: {}]   ;;  %s833_s2 = inlined_call_operand.hbm [shape: f32[1,1,1], index: 2, kind: output, shape index: {0}]   ;;  %s834_s3 = inlined_call_operand.hbm [shape: f32[1,1,1], index: 3, kind: output, shape index: {1}]  }
   0x1   :  { %10 = vsyncpa [#allocation6], 0 }
   0x2   :  { %11 = vsyncpa [#allocation4], 0 }
   0x3   :  { %12 = vsyncpa [#allocation9], 0  ;;  %s17_s14 = sshll.u32 %s831_s0, 4  ;;  %s663_s15 = smov [#allocation2]   ;;  %s18_s14 = int_to_ptr.hbm [resolvable:$true] %s17_s14 }
   0x4   :  { %s19_s16 = sshll.u32 %s663_s15, 4  ;;  %s31_s19 = sshll.u32 %s832_s1, 4  ;;  %s20_s16 = int_to_ptr.vmem [resolvable:$true] %s19_s16  ;;  %s32_s19 = int_to_ptr.hbm [resolvable:$true] %s31_s19 }
   0x5   :  { %s664_s20 = smov 128   ;;  %s665_s21 = smov 8  }
   0x6   :  { %25 = dma.hbm_to_vmem [thread:$0]  %s18_s14, 256, %s20_s16, [#allocation3], %s664_s20, %s664_s20, %s665_s21  }
   0x7   :  { %s666_s22 = smov [#allocation5]  }
   0x8   :  { %s33_s23 = sshll.u32 %s666_s22, 4  ;;  %s34_s23 = int_to_ptr.vmem [resolvable:$true] %s33_s23 }
   0x9   :  { %36 = dma.hbm_to_vmem [thread:$0]  %s32_s19, 128, %s34_s23, [#allocation6]  }
   0xa   :  { %655 = dma.done.wait [#allocation3], 256  }
   0xb   :  { %656 = vsyncadd [#allocation3], 4294967040 }
   0xc   :  { %657 = dma.done.wait [#allocation6], 128  }
   0xd   :  { %658 = vsyncadd [#allocation6], 4294967168  ;;  %v45_v0 = vld [vmem:[#allocation2] sm:$0xff]  ;;  %v47_v1 = vld [vmem:[#allocation2 + $0x8] sm:$0xff]  ;;  %v667_v4 = vmov 0.0   ;;  %v668_v17 = vmov 0  }
   0xe   :  { %v697_v2 = vld [vmem:[#allocation5] sm:$0xff]  ;;  %v699_v3 = vsub.f32 %v47_v1, %v45_v0  ;;  %552 = vset.pattern.permute.xlu1 %v668_v17  ;;  %553 = vset.pattern.permute.xlu2 %v668_v17  ;;  %s669_s0 = smov [#allocation7]   ;;  %s474_s26 = sshll.u32 %s833_s2, 4  ;;  %s475_s26 = int_to_ptr.hbm [resolvable:$true] %s474_s26 }
   0xf   :  { %vm59_vm0 = vcmp.gt.s32.totalorder %v697_v2, 0  ;;  %554 = vset.pattern.permute.xlu0 %v668_v17  ;;  %vm62_vm2 = vcmp.ge.s32.totalorder %v697_v2, 0  ;;  %s472_s1 = sshll.u32 %s669_s0, 4  ;;  %s670_s28 = smov [#allocation8]   ;;  %s473_s1 = int_to_ptr.vmem [resolvable:$true] %s472_s1 }
  0x10   :  { %v501_v5 = vsel %vm59_vm0, 1.0, %v667_v4  ;;  %v51_v6 = vand.u32 2147483647, %v699_v3  ;;  %v50_v11 = vmax.f32 %v699_v3, 0.0  ;;  %v502_v18 = vsel %vm62_vm2, 1.0, %v667_v4  ;;  %s483_s29 = sshll.u32 %s670_s28, 4  ;;  %s484_s29 = int_to_ptr.vmem [resolvable:$true] %s483_s29 }
  0x11   :  { %65 = vadd.xlane.f32.xlu0 %v501_v5  ;;  %s485_s5 = sshll.u32 %s834_s3, 4  ;;  %s486_s5 = int_to_ptr.hbm [resolvable:$true] %s485_s5 }
  0x12   :  { %v52_v7 = vsub.f32 0.0, %v51_v6 }
  0x14   :  { %v53_v8 = vmul.f32 1.442695, %v52_v7 }
  0x16   :  { %555 = vpow2.f32 %v53_v8 }
  0x1c   :  { %v556_v9 = vpop.eup %555 }
  0x1d   :  { %v55_v10 = vadd.f32 1.0, %v556_v9 }
  0x1f   :  { %557 = vlog2.f32 %v55_v10 }
  0x25   :  { %v558_v12 = vpop.eup %557 }
  0x26   :  { %v57_v13 = vmul.f32 0.6931472, %v558_v12 }
  0x28   :  { %v707_v14 = vadd.f32 %v57_v13, %v50_v11 }
  0x2a   :  { %v712_v15 = vsel %vm59_vm0, 4294967295, %v707_v14 }
  0x2b   :  { %vm83_vm1 = vcmp.ge.s32.totalorder %v712_v15, 1073741824 }
  0x2c   :  { %v503_v16 = vsel %vm83_vm1, 1.0, %v667_v4 }
  0x2d   :  { %86 = vadd.xlane.f32.xlu0 %v503_v16 }
  0x84   :  { %v66_v19 = vpop.xlane.xlu0 %65 }
  0x85   :  { %v67_v20 = vmax.f32 %v66_v19, 1.0  ;;  %v75_v30 = vsub.f32 128.0, %v66_v19 }
  0x87   :  { %v718_v21 = vmul.f32 %v502_v18, %v67_v20 }
  0x89   :  { %v69_v22 = vmul.f32 3.0, %v718_v21 }
  0x8b   :  { %vm535_vm3 = vcmp.lt.s32.totalorder %v69_v22, 0  ;;  %v536_v23 = vceil.f32 %v69_v22  ;;  %v537_v24 = vfloor.f32 %v69_v22 }
  0x8d   :  { %v538_v25 = vsel %vm535_vm3, %v536_v23, %v537_v24 }
  0x8e   :  { %v539_v26 = vcvt.f32.s32 %v538_v25 }
  0x90   :  { %v71_v27 = vcvt.s32.f32 %v539_v26 }
  0x92   :  { %v73_v28 = vadd.f32 1.0, %v71_v27  ;;  %vm72_vm4 = vcmp.eq.f32.partialorder %v71_v27, %v69_v22 }
  0x94   :  { %v74_v29 = vsel %vm72_vm4, %v71_v27, %v73_v28 }
  0x95   :  { %v721_v31 = vmin.f32 %v74_v29, %v75_v30 }
  0xa0   :  { %v87_v32 = vpop.xlane.xlu0 %86 }
  0xa1   :  { %vm88_vm5 = vcmp.ge.f32.partialorder %v87_v32, %v721_v31 }
  0xa2   :  { %v89_v33 = vsel %vm88_vm5, 1073741824, %v668_v17 }
  0xa3   :  { %v90_v34 = vor.u32 536870912, %v89_v33 }
  0xa5   :  { %92 = vperm.xlu1 %552, %v90_v34  }
 0x117   :  { %v93_v35 = vpop.permute.xlu1 %92 }
 0x118   :  { %vm94_vm6 = vcmp.ge.s32.totalorder %v712_v15, %v93_v35 }
 0x119   :  { %v504_v36 = vsel %vm94_vm6, 1.0, %v667_v4 }
 0x11a   :  { %97 = vadd.xlane.f32.xlu1 %v504_v36 }
 0x18d   :  { %v98_v37 = vpop.xlane.xlu1 %97 }
 0x18e   :  { %vm99_vm7 = vcmp.ge.f32.partialorder %v98_v37, %v721_v31 }
 0x18f   :  { %v100_v38 = vsel %vm99_vm7, %v90_v34, %v89_v33 }
 0x190   :  { %v101_v39 = vor.u32 268435456, %v100_v38 }
 0x192   :  { %103 = vperm.xlu2 %553, %v101_v39  }
 0x1ec   :  { %v104_v40 = vpop.permute.xlu2 %103 }
 0x1ed   :  { %vm105_vm8 = vcmp.ge.s32.totalorder %v712_v15, %v104_v40 }
 0x1ee   :  { %v505_v41 = vsel %vm105_vm8, 1.0, %v667_v4 }
 0x1ef   :  { %108 = vadd.xlane.f32.xlu2 %v505_v41 }
 0x262   :  { %v109_v42 = vpop.xlane.xlu2 %108 }
 0x263   :  { %vm110_vm9 = vcmp.ge.f32.partialorder %v109_v42, %v721_v31 }
 0x264   :  { %v111_v43 = vsel %vm110_vm9, %v101_v39, %v100_v38 }
 0x265   :  { %v112_v44 = vor.u32 134217728, %v111_v43 }
 0x267   :  { %114 = vperm.xlu0 %554, %v112_v44  }
 0x2d9   :  { %v115_v45 = vpop.permute.xlu0 %114 }
 0x2da   :  { %vm116_vm10 = vcmp.ge.s32.totalorder %v712_v15, %v115_v45 }
 0x2db   :  { %v506_v46 = vsel %vm116_vm10, 1.0, %v667_v4 }
 0x2dc   :  { %119 = vadd.xlane.f32.xlu2 %v506_v46 }
 0x34f   :  { %v120_v47 = vpop.xlane.xlu2 %119 }
 0x350   :  { %vm121_vm11 = vcmp.ge.f32.partialorder %v120_v47, %v721_v31 }
 0x351   :  { %v122_v48 = vsel %vm121_vm11, %v112_v44, %v111_v43 }
 0x352   :  { %v123_v49 = vor.u32 67108864, %v122_v48 }
 0x354   :  { %125 = vperm.xlu1 %552, %v123_v49  }
 0x3c6   :  { %v126_v50 = vpop.permute.xlu1 %125 }
 0x3c7   :  { %vm127_vm12 = vcmp.ge.s32.totalorder %v712_v15, %v126_v50 }
 0x3c8   :  { %v507_v51 = vsel %vm127_vm12, 1.0, %v667_v4 }
 0x3c9   :  { %130 = vadd.xlane.f32.xlu0 %v507_v51 }
 0x43c   :  { %v131_v52 = vpop.xlane.xlu0 %130 }
 0x43d   :  { %vm132_vm13 = vcmp.ge.f32.partialorder %v131_v52, %v721_v31 }
 0x43e   :  { %v133_v53 = vsel %vm132_vm13, %v123_v49, %v122_v48 }
 0x43f   :  { %v134_v54 = vor.u32 33554432, %v133_v53 }
 0x441   :  { %136 = vperm.xlu2 %553, %v134_v54  }
 0x49b   :  { %v137_v55 = vpop.permute.xlu2 %136 }
 0x49c   :  { %vm138_vm14 = vcmp.ge.s32.totalorder %v712_v15, %v137_v55 }
 0x49d   :  { %v508_v56 = vsel %vm138_vm14, 1.0, %v667_v4 }
 0x49e   :  { %141 = vadd.xlane.f32.xlu1 %v508_v56 }
 0x511   :  { %v142_v57 = vpop.xlane.xlu1 %141 }
 0x512   :  { %vm143_vm15 = vcmp.ge.f32.partialorder %v142_v57, %v721_v31 }
 0x513   :  { %v144_v58 = vsel %vm143_vm15, %v134_v54, %v133_v53 }
 0x514   :  { %v145_v59 = vor.u32 16777216, %v144_v58 }
 0x516   :  { %147 = vperm.xlu2 %553, %v145_v59  }
 0x570   :  { %v148_v60 = vpop.permute.xlu2 %147 }
 0x571   :  { %vm149_vm1 = vcmp.ge.s32.totalorder %v712_v15, %v148_v60 }
 0x572   :  { %v509_v61 = vsel %vm149_vm1, 1.0, %v667_v4 }
 0x573   :  { %152 = vadd.xlane.f32.xlu2 %v509_v61 }
 0x5e6   :  { %v153_v62 = vpop.xlane.xlu2 %152 }
 0x5e7   :  { %vm154_vm2 = vcmp.ge.f32.partialorder %v153_v62, %v721_v31 }
 0x5e8   :  { %v155_v63 = vsel %vm154_vm2, %v145_v59, %v144_v58 }
 0x5e9   :  { %v156_v0 = vor.u32 8388608, %v155_v63 }
 0x5eb   :  { %158 = vperm.xlu0 %554, %v156_v0  }
 0x65d   :  { %v159_v1 = vpop.permute.xlu0 %158 }
 0x65e   :  { %vm160_vm3 = vcmp.ge.s32.totalorder %v712_v15, %v159_v1 }
 0x65f   :  { %v510_v5 = vsel %vm160_vm3, 1.0, %v667_v4 }
 0x660   :  { %163 = vadd.xlane.f32.xlu1 %v510_v5 }
 0x6d3   :  { %v164_v6 = vpop.xlane.xlu1 %163 }
 0x6d4   :  { %vm165_vm4 = vcmp.ge.f32.partialorder %v164_v6, %v721_v31 }
 0x6d5   :  { %v166_v7 = vsel %vm165_vm4, %v156_v0, %v155_v63 }
 0x6d6   :  { %v167_v8 = vor.u32 4194304, %v166_v7 }
 0x6d8   :  { %169 = vperm.xlu0 %554, %v167_v8  }
 0x74a   :  { %v170_v9 = vpop.permute.xlu0 %169 }
 0x74b   :  { %vm171_vm5 = vcmp.ge.s32.totalorder %v712_v15, %v170_v9 }
 0x74c   :  { %v511_v10 = vsel %vm171_vm5, 1.0, %v667_v4 }
 0x74d   :  { %174 = vadd.xlane.f32.xlu1 %v511_v10 }
 0x7c0   :  { %v175_v11 = vpop.xlane.xlu1 %174 }
 0x7c1   :  { %vm176_vm6 = vcmp.ge.f32.partialorder %v175_v11, %v721_v31 }
 0x7c2   :  { %v177_v12 = vsel %vm176_vm6, %v167_v8, %v166_v7 }
 0x7c3   :  { %v178_v13 = vor.u32 2097152, %v177_v12 }
 0x7c5   :  { %180 = vperm.xlu0 %554, %v178_v13  }
 0x837   :  { %v181_v16 = vpop.permute.xlu0 %180 }
 0x838   :  { %vm182_vm7 = vcmp.ge.s32.totalorder %v712_v15, %v181_v16 }
 0x839   :  { %v512_v17 = vsel %vm182_vm7, 1.0, %v667_v4 }
 0x83a   :  { %185 = vadd.xlane.f32.xlu2 %v512_v17 }
 0x8ad   :  { %v186_v18 = vpop.xlane.xlu2 %185 }
 0x8ae   :  { %vm187_vm8 = vcmp.ge.f32.partialorder %v186_v18, %v721_v31 }
 0x8af   :  { %v188_v19 = vsel %vm187_vm8, %v178_v13, %v177_v12 }
 0x8b0   :  { %v189_v20 = vor.u32 1048576, %v188_v19 }
 0x8b2   :  { %191 = vperm.xlu1 %552, %v189_v20  }
 0x924   :  { %v192_v22 = vpop.permute.xlu1 %191 }
 0x925   :  { %vm193_vm9 = vcmp.ge.s32.totalorder %v712_v15, %v192_v22 }
 0x926   :  { %v513_v23 = vsel %vm193_vm9, 1.0, %v667_v4 }
 0x927   :  { %196 = vadd.xlane.f32.xlu0 %v513_v23 }
 0x99a   :  { %v197_v24 = vpop.xlane.xlu0 %196 }
 0x99b   :  { %vm198_vm10 = vcmp.ge.f32.partialorder %v197_v24, %v721_v31 }
 0x99c   :  { %v199_v25 = vsel %vm198_vm10, %v189_v20, %v188_v19 }
 0x99d   :  { %v200_v26 = vor.u32 524288, %v199_v25 }
 0x99f   :  { %202 = vperm.xlu2 %553, %v200_v26  }
 0x9f9   :  { %v203_v27 = vpop.permute.xlu2 %202 }
 0x9fa   :  { %vm204_vm11 = vcmp.ge.s32.totalorder %v712_v15, %v203_v27 }
 0x9fb   :  { %v514_v28 = vsel %vm204_vm11, 1.0, %v667_v4 }
 0x9fc   :  { %207 = vadd.xlane.f32.xlu1 %v514_v28 }
 0xa6f   :  { %v208_v29 = vpop.xlane.xlu1 %207 }
 0xa70   :  { %vm209_vm12 = vcmp.ge.f32.partialorder %v208_v29, %v721_v31 }
 0xa71   :  { %v210_v30 = vsel %vm209_vm12, %v200_v26, %v199_v25 }
 0xa72   :  { %v211_v32 = vor.u32 262144, %v210_v30 }
 0xa74   :  { %213 = vperm.xlu2 %553, %v211_v32  }
 0xace   :  { %v214_v33 = vpop.permute.xlu2 %213 }
 0xacf   :  { %vm215_vm13 = vcmp.ge.s32.totalorder %v712_v15, %v214_v33 }
 0xad0   :  { %v515_v34 = vsel %vm215_vm13, 1.0, %v667_v4 }
 0xad1   :  { %218 = vadd.xlane.f32.xlu2 %v515_v34 }
 0xb44   :  { %v219_v35 = vpop.xlane.xlu2 %218 }
 0xb45   :  { %vm220_vm14 = vcmp.ge.f32.partialorder %v219_v35, %v721_v31 }
 0xb46   :  { %v221_v36 = vsel %vm220_vm14, %v211_v32, %v210_v30 }
 0xb47   :  { %v222_v37 = vor.u32 131072, %v221_v36 }
 0xb49   :  { %224 = vperm.xlu0 %554, %v222_v37  }
 0xbbb   :  { %v225_v38 = vpop.permute.xlu0 %224 }
 0xbbc   :  { %vm226_vm15 = vcmp.ge.s32.totalorder %v712_v15, %v225_v38 }
 0xbbd   :  { %v516_v39 = vsel %vm226_vm15, 1.0, %v667_v4 }
 0xbbe   :  { %229 = vadd.xlane.f32.xlu0 %v516_v39 }
 0xc31   :  { %v230_v40 = vpop.xlane.xlu0 %229 }
 0xc32   :  { %vm231_vm1 = vcmp.ge.f32.partialorder %v230_v40, %v721_v31 }
 0xc33   :  { %v232_v41 = vsel %vm231_vm1, %v222_v37, %v221_v36 }
 0xc34   :  { %v233_v42 = vor.u32 65536, %v232_v41 }
 0xc36   :  { %235 = vperm.xlu1 %552, %v233_v42  }
 0xca8   :  { %v236_v43 = vpop.permute.xlu1 %235 }
 0xca9   :  { %vm237_vm2 = vcmp.ge.s32.totalorder %v712_v15, %v236_v43 }
 0xcaa   :  { %v517_v44 = vsel %vm237_vm2, 1.0, %v667_v4 }
 0xcab   :  { %240 = vadd.xlane.f32.xlu2 %v517_v44 }
 0xd1e   :  { %v241_v45 = vpop.xlane.xlu2 %240 }
 0xd1f   :  { %vm242_vm3 = vcmp.ge.f32.partialorder %v241_v45, %v721_v31 }
 0xd20   :  { %v243_v46 = vsel %vm242_vm3, %v233_v42, %v232_v41 }
 0xd21   :  { %v244_v47 = vor.u32 32768, %v243_v46 }
 0xd23   :  { %246 = vperm.xlu2 %553, %v244_v47  }
 0xd7d   :  { %v247_v48 = vpop.permute.xlu2 %246 }
 0xd7e   :  { %vm248_vm4 = vcmp.ge.s32.totalorder %v712_v15, %v247_v48 }
 0xd7f   :  { %v518_v49 = vsel %vm248_vm4, 1.0, %v667_v4 }
 0xd80   :  { %251 = vadd.xlane.f32.xlu1 %v518_v49 }
 0xdf3   :  { %v252_v50 = vpop.xlane.xlu1 %251 }
 0xdf4   :  { %vm253_vm5 = vcmp.ge.f32.partialorder %v252_v50, %v721_v31 }
 0xdf5   :  { %v254_v51 = vsel %vm253_vm5, %v244_v47, %v243_v46 }
 0xdf6   :  { %v255_v52 = vor.u32 16384, %v254_v51 }
 0xdf8   :  { %257 = vperm.xlu0 %554, %v255_v52  }
 0xe6a   :  { %v258_v53 = vpop.permute.xlu0 %257 }
 0xe6b   :  { %vm259_vm6 = vcmp.ge.s32.totalorder %v712_v15, %v258_v53 }
 0xe6c   :  { %v519_v54 = vsel %vm259_vm6, 1.0, %v667_v4 }
 0xe6d   :  { %262 = vadd.xlane.f32.xlu2 %v519_v54 }
 0xee0   :  { %v263_v55 = vpop.xlane.xlu2 %262 }
 0xee1   :  { %vm264_vm7 = vcmp.ge.f32.partialorder %v263_v55, %v721_v31 }
 0xee2   :  { %v265_v56 = vsel %vm264_vm7, %v255_v52, %v254_v51 }
 0xee3   :  { %v266_v57 = vor.u32 8192, %v265_v56 }
 0xee5   :  { %268 = vperm.xlu0 %554, %v266_v57  }
 0xf57   :  { %v269_v58 = vpop.permute.xlu0 %268 }
 0xf58   :  { %vm270_vm8 = vcmp.ge.s32.totalorder %v712_v15, %v269_v58 }
 0xf59   :  { %v520_v59 = vsel %vm270_vm8, 1.0, %v667_v4 }
 0xf5a   :  { %273 = vadd.xlane.f32.xlu0 %v520_v59 }
 0xfcd   :  { %v274_v60 = vpop.xlane.xlu0 %273 }
 0xfce   :  { %vm275_vm9 = vcmp.ge.f32.partialorder %v274_v60, %v721_v31 }
 0xfcf   :  { %v276_v61 = vsel %vm275_vm9, %v266_v57, %v265_v56 }
 0xfd0   :  { %v277_v62 = vor.u32 4096, %v276_v61 }
 0xfd2   :  { %279 = vperm.xlu1 %552, %v277_v62  }
0x1044   :  { %v280_v63 = vpop.permute.xlu1 %279 }
0x1045   :  { %vm281_vm10 = vcmp.ge.s32.totalorder %v712_v15, %v280_v63 }
0x1046   :  { %v521_v0 = vsel %vm281_vm10, 1.0, %v667_v4 }
0x1047   :  { %284 = vadd.xlane.f32.xlu2 %v521_v0 }
0x10ba   :  { %v285_v1 = vpop.xlane.xlu2 %284 }
0x10bb   :  { %vm286_vm11 = vcmp.ge.f32.partialorder %v285_v1, %v721_v31 }
0x10bc   :  { %v287_v5 = vsel %vm286_vm11, %v277_v62, %v276_v61 }
0x10bd   :  { %v288_v6 = vor.u32 2048, %v287_v5 }
0x10bf   :  { %290 = vperm.xlu1 %552, %v288_v6  }
0x1131   :  { %v291_v7 = vpop.permute.xlu1 %290 }
0x1132   :  { %vm292_vm12 = vcmp.ge.s32.totalorder %v712_v15, %v291_v7 }
0x1133   :  { %v522_v8 = vsel %vm292_vm12, 1.0, %v667_v4 }
0x1134   :  { %295 = vadd.xlane.f32.xlu2 %v522_v8 }
0x11a7   :  { %v296_v9 = vpop.xlane.xlu2 %295 }
0x11a8   :  { %vm297_vm13 = vcmp.ge.f32.partialorder %v296_v9, %v721_v31  ;;  %v77_v9 = vsub.f32 %v707_v14, %v699_v3 }
0x11a9   :  { %v298_v10 = vsel %vm297_vm13, %v288_v6, %v287_v5 }
0x11aa   :  { %v299_v11 = vor.u32 1024, %v298_v10 }
0x11ac   :  { %301 = vperm.xlu1 %552, %v299_v11  }
0x121e   :  { %v302_v12 = vpop.permute.xlu1 %301 }
0x121f   :  { %vm303_vm14 = vcmp.ge.s32.totalorder %v712_v15, %v302_v12 }
0x1220   :  { %v523_v13 = vsel %vm303_vm14, 1.0, %v667_v4 }
0x1221   :  { %306 = vadd.xlane.f32.xlu2 %v523_v13 }
0x1294   :  { %v307_v16 = vpop.xlane.xlu2 %306 }
0x1295   :  { %vm308_vm15 = vcmp.ge.f32.partialorder %v307_v16, %v721_v31 }
0x1296   :  { %v309_v17 = vsel %vm308_vm15, %v299_v11, %v298_v10  ;;  %v78_v10 = vsel %vm59_vm0, %v77_v9, 0.0  ;;  %vm439_vm0 = vcmask 7168  }
0x1297   :  { %v310_v18 = vor.u32 512, %v309_v17 }
0x1299   :  { %312 = vperm.xlu0 %554, %v310_v18  }
0x130b   :  { %v313_v19 = vpop.permute.xlu0 %312 }
0x130c   :  { %vm314_vm1 = vcmp.ge.s32.totalorder %v712_v15, %v313_v19 }
0x130d   :  { %v524_v20 = vsel %vm314_vm1, 1.0, %v667_v4 }
0x130e   :  { %317 = vadd.xlane.f32.xlu1 %v524_v20 }
0x1381   :  { %v318_v22 = vpop.xlane.xlu1 %317 }
0x1382   :  { %vm319_vm2 = vcmp.ge.f32.partialorder %v318_v22, %v721_v31 }
0x1383   :  { %v320_v23 = vsel %vm319_vm2, %v310_v18, %v309_v17 }
0x1384   :  { %v321_v24 = vor.u32 256, %v320_v23 }
0x1386   :  { %323 = vperm.xlu2 %553, %v321_v24  }
0x13e0   :  { %v324_v25 = vpop.permute.xlu2 %323 }
0x13e1   :  { %vm325_vm3 = vcmp.ge.s32.totalorder %v712_v15, %v324_v25 }
0x13e2   :  { %v525_v26 = vsel %vm325_vm3, 1.0, %v667_v4 }
0x13e3   :  { %328 = vadd.xlane.f32.xlu0 %v525_v26 }
0x1456   :  { %v329_v27 = vpop.xlane.xlu0 %328 }
0x1457   :  { %vm330_vm4 = vcmp.ge.f32.partialorder %v329_v27, %v721_v31 }
0x1458   :  { %v331_v28 = vsel %vm330_vm4, %v321_v24, %v320_v23  ;;  %v450_v24 = vsel %vm439_vm0, %v718_v21, 0.0 }
0x1459   :  { %v332_v29 = vor.u32 128, %v331_v28 }
0x145b   :  { %334 = vperm.xlu2 %553, %v332_v29  }
0x14b5   :  { %v335_v30 = vpop.permute.xlu2 %334 }
0x14b6   :  { %vm336_vm5 = vcmp.ge.s32.totalorder %v712_v15, %v335_v30 }
0x14b7   :  { %v526_v32 = vsel %vm336_vm5, 1.0, %v667_v4 }
0x14b8   :  { %339 = vadd.xlane.f32.xlu2 %v526_v32 }
0x152b   :  { %v340_v33 = vpop.xlane.xlu2 %339 }
0x152c   :  { %vm341_vm6 = vcmp.ge.f32.partialorder %v340_v33, %v721_v31 }
0x152d   :  { %v342_v34 = vsel %vm341_vm6, %v332_v29, %v331_v28 }
0x152e   :  { %v343_v35 = vor.u32 64, %v342_v34 }
0x1530   :  { %345 = vperm.xlu1 %552, %v343_v35  }
0x15a2   :  { %v346_v36 = vpop.permute.xlu1 %345 }
0x15a3   :  { %vm347_vm7 = vcmp.ge.s32.totalorder %v712_v15, %v346_v36 }
0x15a4   :  { %v527_v37 = vsel %vm347_vm7, 1.0, %v667_v4 }
0x15a5   :  { %350 = vadd.xlane.f32.xlu0 %v527_v37 }
0x1618   :  { %v351_v38 = vpop.xlane.xlu0 %350 }
0x1619   :  { %vm352_vm8 = vcmp.ge.f32.partialorder %v351_v38, %v721_v31 }
0x161a   :  { %v353_v39 = vsel %vm352_vm8, %v343_v35, %v342_v34  ;;  %vm462_vm8 = vcmask 0  }
0x161b   :  { %v354_v40 = vor.u32 32, %v353_v39 }
0x161d   :  { %356 = vperm.xlu1 %552, %v354_v40  }
0x168f   :  { %v357_v41 = vpop.permute.xlu1 %356 }
0x1690   :  { %vm358_vm9 = vcmp.ge.s32.totalorder %v712_v15, %v357_v41 }
0x1691   :  { %v528_v42 = vsel %vm358_vm9, 1.0, %v667_v4 }
0x1692   :  { %361 = vadd.xlane.f32.xlu0 %v528_v42 }
0x1705   :  { %v362_v43 = vpop.xlane.xlu0 %361 }
0x1706   :  { %vm363_vm10 = vcmp.ge.f32.partialorder %v362_v43, %v721_v31 }
0x1707   :  { %v364_v44 = vsel %vm363_vm10, %v354_v40, %v353_v39 }
0x1708   :  { %v365_v45 = vor.u32 16, %v364_v44 }
0x170a   :  { %367 = vperm.xlu2 %553, %v365_v45  }
0x1764   :  { %v368_v46 = vpop.permute.xlu2 %367 }
0x1765   :  { %vm369_vm11 = vcmp.ge.s32.totalorder %v712_v15, %v368_v46 }
0x1766   :  { %v529_v47 = vsel %vm369_vm11, 1.0, %v667_v4 }
0x1767   :  { %372 = vadd.xlane.f32.xlu1 %v529_v47 }
0x17da   :  { %v373_v48 = vpop.xlane.xlu1 %372 }
0x17db   :  { %vm374_vm12 = vcmp.ge.f32.partialorder %v373_v48, %v721_v31 }
0x17dc   :  { %v375_v49 = vsel %vm374_vm12, %v365_v45, %v364_v44 }
0x17dd   :  { %v376_v50 = vor.u32 8, %v375_v49 }
0x17df   :  { %378 = vperm.xlu0 %554, %v376_v50  }
0x1851   :  { %v379_v51 = vpop.permute.xlu0 %378 }
0x1852   :  { %vm380_vm13 = vcmp.ge.s32.totalorder %v712_v15, %v379_v51 }
0x1853   :  { %v530_v52 = vsel %vm380_vm13, 1.0, %v667_v4 }
0x1854   :  { %383 = vadd.xlane.f32.xlu2 %v530_v52 }
0x18c7   :  { %v384_v53 = vpop.xlane.xlu2 %383 }
0x18c8   :  { %vm385_vm14 = vcmp.ge.f32.partialorder %v384_v53, %v721_v31 }
0x18c9   :  { %v386_v54 = vsel %vm385_vm14, %v376_v50, %v375_v49 }
0x18ca   :  { %v387_v55 = vor.u32 4, %v386_v54 }
0x18cc   :  { %389 = vperm.xlu0 %554, %v387_v55  }
0x193e   :  { %v390_v56 = vpop.permute.xlu0 %389 }
0x193f   :  { %vm391_vm15 = vcmp.ge.s32.totalorder %v712_v15, %v390_v56 }
0x1940   :  { %v531_v57 = vsel %vm391_vm15, 1.0, %v667_v4 }
0x1941   :  { %394 = vadd.xlane.f32.xlu0 %v531_v57 }
0x19b4   :  { %v395_v58 = vpop.xlane.xlu0 %394 }
0x19b5   :  { %vm396_vm1 = vcmp.ge.f32.partialorder %v395_v58, %v721_v31 }
0x19b6   :  { %v397_v59 = vsel %vm396_vm1, %v387_v55, %v386_v54 }
0x19b7   :  { %v398_v60 = vor.u32 2, %v397_v59 }
0x19b9   :  { %400 = vperm.xlu1 %552, %v398_v60  }
0x1a2b   :  { %v401_v61 = vpop.permute.xlu1 %400 }
0x1a2c   :  { %vm402_vm2 = vcmp.ge.s32.totalorder %v712_v15, %v401_v61 }
0x1a2d   :  { %v532_v62 = vsel %vm402_vm2, 1.0, %v667_v4 }
0x1a2e   :  { %405 = vadd.xlane.f32.xlu2 %v532_v62 }
0x1aa1   :  { %v406_v63 = vpop.xlane.xlu2 %405 }
0x1aa2   :  { %vm407_vm3 = vcmp.ge.f32.partialorder %v406_v63, %v721_v31 }
0x1aa3   :  { %v408_v0 = vsel %vm407_vm3, %v398_v60, %v397_v59 }
0x1aa4   :  { %v409_v1 = vor.u32 1, %v408_v0 }
0x1aa6   :  { %411 = vperm.xlu1 %552, %v409_v1  }
0x1b18   :  { %v412_v5 = vpop.permute.xlu1 %411 }
0x1b19   :  { %vm413_vm4 = vcmp.ge.s32.totalorder %v712_v15, %v412_v5 }
0x1b1a   :  { %v533_v6 = vsel %vm413_vm4, 1.0, %v667_v4 }
0x1b1b   :  { %416 = vadd.xlane.f32.xlu2 %v533_v6 }
0x1b8e   :  { %v417_v7 = vpop.xlane.xlu2 %416 }
0x1b8f   :  { %vm418_vm5 = vcmp.ge.f32.partialorder %v417_v7, %v721_v31 }
0x1b90   :  { %v419_v8 = vsel %vm418_vm5, %v409_v1, %v408_v0 }
0x1b91   :  { %421 = vperm.xlu0 %554, %v419_v8  }
0x1bbb   :  { %79 = vadd.xlane.f32.xlu0 %v78_v10 }
0x1c03   :  { %v422_v11 = vpop.permute.xlu0 %421 }
0x1c04   :  { %vm431_vm6 = vcmp.eq.s32.totalorder %v712_v15, %v422_v11  ;;  %vm423_vm7 = vcmp.gt.s32.totalorder %v712_v15, %v422_v11 }
0x1c05   :  { %v432_v12 = vsel %vm431_vm6, %v707_v14, 0.0  ;;  %v534_v13 = vsel %vm423_vm7, 1.0, %v667_v4  ;;  %v428_v16 = vsel %vm423_vm7, %v707_v14, 0.0 }
0x1c06   :  { %433 = vmax.xlane.f32.xlu2 %v432_v12  ;;  %426 = vadd.xlane.f32.xlu1 %v534_v13 }
0x1c0e   :  { %429 = vadd.xlane.f32.xlu2 %v428_v16 }
0x1c2e   :  { %v80_v20 = vpop.xlane.xlu0 %79 }
0x1c79   :  { %v434_v17 = vpop.xlane.xlu2 %433  ;;  %v427_v3 = vpop.xlane.xlu1 %426 }
0x1c7a   :  { %v435_v2 = vsub.f32 %v721_v31, %v427_v3 }
0x1c7c   :  { %v436_v18 = vmul.f32 %v435_v2, %v434_v17 }
0x1c81   :  { %v430_v19 = vpop.xlane.xlu2 %429 }
0x1c82   :  { %v437_v22 = vadd.f32 %v436_v18, %v430_v19 }
0x1c84   :  { %v438_v23 = vadd.f32 %v437_v22, %v80_v20 }
0x1c86   :  { %v440_v15 = vsel %vm439_vm0, %v438_v23, 0.0 }
0x1c87   :  { %441 = vadd.xlane.f32.xlu2 %v440_v15 }
0x1c8f   :  { %451 = vadd.xlane.f32.xlu2 %v450_v24 }
0x1cfa   :  { %v442_v4 = vpop.xlane.xlu2 %441 }
0x1cfb   :  { %v443_v25 = vrot.slane %v442_v4, 4 }
0x1cfd   :  { %v444_v26 = vadd.f32 %v443_v25, %v442_v4 }
0x1cff   :  { %v445_v14 = vrot.slane %v444_v26, 2 }
0x1d01   :  { %v446_v27 = vadd.f32 %v445_v14, %v444_v26 }
0x1d02   :  { %v452_v28 = vpop.xlane.xlu2 %451 }
0x1d03   :  { %v453_v29 = vrot.slane %v452_v28, 4  ;;  %v447_v30 = vrot.slane %v446_v27, 1 }
0x1d05   :  { %v454_v31 = vadd.f32 %v453_v29, %v452_v28  ;;  %v448_v32 = vadd.f32 %v447_v30, %v446_v27 }
0x1d07   :  { %v455_v33 = vrot.slane %v454_v31, 2  ;;  %540 = vpush %v448_v32 }
0x1d09   :  { %v456_v34 = vadd.f32 %v455_v33, %v454_v31 }
0x1d0b   :  { %v457_v35 = vrot.slane %v456_v34, 1 }
0x1d0d   :  { %v458_v36 = vadd.f32 %v457_v35, %v456_v34 }
0x1d0f   :  { %542 = vpush %v458_v36 }
0x1d38   :  { %s541_s27 = spop %540 }
0x1d39   :  { %v460_v21 = vstv %s541_s27 }
0x1d3a   :  { %463 = vst.msk [vmem:[#allocation7] sm:$0x1] %vm462_vm8, %v460_v21 }
0x1d3b   :  { %477 = dma.vmem_to_hbm [thread:$0]  %s473_s1, 16, %s475_s26, [#allocation4]  }
0x1d40   :  { %s543_s6 = spop %542 }
0x1d41   :  { %v464_v37 = vstv %s543_s6 }
0x1d42   :  { %466 = vst.msk [vmem:[#allocation8] sm:$0x1] %vm462_vm8, %v464_v37 }
0x1d43   :  { %488 = dma.vmem_to_hbm [thread:$0]  %s484_s29, 16, %s486_s5, [#allocation9]  }
0x1d44   :  { %659 = dma.done.wait [#allocation4], 16  }
0x1d45   :  { %660 = vsyncadd [#allocation4], 4294967280 }
0x1d46   :  { %661 = dma.done.wait [#allocation9], 16  }
0x1d47   :  { %662 = vsyncadd [#allocation9], 4294967280 }
0x1d48   :  { %497 = vsyncpa [#allocation3], 1 }
0x1d49   :  { %498 = vsyncpa [#allocation6], 1 }
0x1d4a   :  { %499 = vsyncpa [#allocation4], 1 }
0x1d4b   :  { %500 = vsyncpa [#allocation9], 1 }

</bundles_post_ra>
